<compile_context>
chip_gen: v5e
topology: v5e:2x2
jax: 0.10.0
libtpu: 0.0.40
codegen_flags: <defaults>
</compile_context>

<pallas_src>
import functools

import jax
import jax.numpy as jnp
from jax.experimental import pallas as pl
from jax.experimental.pallas import tpu as pltpu

_SMALL_D_THRESHOLD = 128   # <= this -> lane-dense (feature-major) path


def _round_up(x, m):
    return ((x + m - 1) // m) * m


def _sublane_pack(dtype):
    """Sublane multiple for packed dtypes: 8 (f32), 16 (bf16), 32 (int8/fp8)."""
    itemsize = jnp.dtype(dtype).itemsize
    return max(8, 8 * (4 // max(itemsize, 1)))


def _chip_config():
    """(num_cores, tile_budget_bytes, vmem_limit_bytes) per TPU generation."""
    try:
        kind = jax.devices()[0].device_kind.lower()
    except Exception:
        kind = ""
    if "7" in kind:
        # v7x: 2 TensorCores/chip, 64 MiB VMEM per TC -> keep headroom.
        return 2, 40 * 1024 * 1024, 48 * 1024 * 1024
    # v5e / v6e (and default): single TensorCore, 128 MiB VMEM.
    return 1, 48 * 1024 * 1024, 64 * 1024 * 1024


def _contrastive_loss_kernel(x0_ref, x1_ref, y_ref, out_ref, acc_ref, *,
                             margin, scale, feature_axis):
    """feature_axis=1: blocks are (TB, D), y is (TB, 1)  (row-major path).
       feature_axis=0: blocks are (D, TL), y is (1, TL)  (lane-dense path)."""
    i = pl.program_id(1)                 # streaming axis ("arbitrary")
    n_i = pl.num_programs(1)

    @pl.when(i == 0)
    def _init():
        acc_ref[...] = jnp.zeros_like(acc_ref)

    x0 = x0_ref[...].astype(jnp.float32)
    x1 = x1_ref[...].astype(jnp.float32)
    y = y_ref[...].astype(jnp.float32)

    diff = x0 - x1
    dist_sq = jnp.sum(diff * diff, axis=feature_axis, keepdims=True)
    dist = jnp.sqrt(dist_sq)
    dist_c = jnp.maximum(margin - dist, 0.0)
    loss = y * dist_sq + (1.0 - y) * dist_c * dist_c
    # No padding mask needed: padded x rows are 0 (dist_sq = 0) and padded y
    # is 1.0, so padded elements contribute exactly 0.

    acc_ref[...] += jnp.sum(loss, axis=1 - feature_axis, keepdims=True)  # (1,1)

    @pl.when(i == n_i - 1)
    def _finalize():
        out_ref[0] = acc_ref[...] * scale        # single store per core


def contrastive_loss(x0, x1, y, margin=2.0):
    """x0, x1: (B, D) any float dtype; y: (B,) or (B, 1) labels in {0, 1}."""
    B, D = x0.shape
    num_cores, tile_budget, vmem_limit = _chip_config()
    itemsize = jnp.dtype(x0.dtype).itemsize
    y_flat = y.astype(jnp.float32).reshape(B)

    if D <= _SMALL_D_THRESHOLD:
        # --- lane-dense epilogue path: feature-major (D, TL) tiles ---------
        per_core = -(-B // num_cores)
        max_lanes = max(128, (tile_budget // (4 * D * itemsize)) // 128 * 128)
        tl = max(128, min(_round_up(per_core, 128), max_lanes))
        cols_padded = _round_up(B, num_cores * tl)
        tiles_per_core = cols_padded // (num_cores * tl)
        pad = cols_padded - B

        x0a = x0.T                                   # (D, B), native dtype
        x1a = x1.T
        ya = y_flat.reshape(1, B)
        if pad:
            x0a = jnp.pad(x0a, ((0, 0), (0, pad)))
            x1a = jnp.pad(x1a, ((0, 0), (0, pad)))
            ya = jnp.pad(ya, ((0, 0), (0, pad)), constant_values=1.0)

        feature_axis = 0
        block_x = (D, tl)
        block_y = (1, tl)
        idx_map = lambda c, i, tpc=tiles_per_core: (0, c * tpc + i)
    else:
        # --- HBM-bound path: row-streaming (TB, D) tiles --------------------
        sub = _sublane_pack(x0.dtype)
        per_core = -(-B // num_cores)
        max_rows = max(sub, (tile_budget // (4 * D * itemsize)) // sub * sub)
        tb = max(sub, min(_round_up(per_core, sub), max_rows))
        rows_padded = _round_up(B, num_cores * tb)
        tiles_per_core = rows_padded // (num_cores * tb)
        pad = rows_padded - B

        x0a = x0                                     # native dtype, no cast
        x1a = x1
        ya = y_flat.reshape(B, 1)
        if pad:
            x0a = jnp.pad(x0a, ((0, pad), (0, 0)))
            x1a = jnp.pad(x1a, ((0, pad), (0, 0)))
            ya = jnp.pad(ya, ((0, pad), (0, 0)), constant_values=1.0)

        feature_axis = 1
        block_x = (tb, D)
        block_y = (tb, 1)
        idx_map = lambda c, i, tpc=tiles_per_core: (c * tpc + i, 0)

    kernel = functools.partial(
        _contrastive_loss_kernel,
        margin=float(margin),
        scale=0.5 / float(B),           # single multiply instead of /2.0/B
        feature_axis=feature_axis,
    )

    partials = pl.pallas_call(
        kernel,
        out_shape=jax.ShapeDtypeStruct((num_cores, 1, 1), jnp.float32),
        grid_spec=pltpu.PrefetchScalarGridSpec(
            num_scalar_prefetch=0,
            grid=(num_cores, tiles_per_core),
            in_specs=[
                pl.BlockSpec(block_x, idx_map),
                pl.BlockSpec(block_x, idx_map),
                pl.BlockSpec(block_y, idx_map),
            ],
            out_specs=pl.BlockSpec((1, 1, 1), lambda c, i: (c, 0, 0)),
            scratch_shapes=[pltpu.VMEM((1, 1), jnp.float32)],
        ),
        compiler_params=pltpu.CompilerParams(
            dimension_semantics=("parallel", "arbitrary"),
            vmem_limit_bytes=vmem_limit,
        ),
    )(x0a, x1a, ya)

    return jnp.sum(partials)


def _reference(x0, x1, y, margin=2.0):
    diff = x0 - x1
    dist_sq = jnp.sum(diff * diff, axis=1)
    dist = jnp.sqrt(dist_sq)
    dist_c = jnp.clip(margin - dist, 0.0, None)
    loss = y * dist_sq + (1.0 - y) * dist_c * dist_c
    return jnp.sum(loss) / 2.0 / x0.shape[0]


if __name__ == "__main__":
    key = jax.random.PRNGKey(0)
    k0, k1, k2, k3, k4 = jax.random.split(key, 5)

    # Small-D inputs (exercise the lane-dense epilogue path).
    B, D = 8, 32
    x0 = jax.random.normal(k0, (B, D), dtype=jnp.float32)
    x1 = jax.random.normal(k1, (B, D), dtype=jnp.float32)
    y = jax.random.bernoulli(k2, 0.5, (B,)).astype(jnp.float32)

    loss = contrastive_loss(x0, x1, y, margin=2.0)
    jax.block_until_ready(loss)
    ref = _reference(x0, x1, y, margin=2.0)
    assert jnp.allclose(loss, ref, atol=1e-4, rtol=1e-4), (loss, ref)

    # Larger-D native-bf16 inputs (exercise the row-streaming path, no wrapper cast).
    B2, D2 = 16, 256
    x0b = jax.random.normal(k3, (B2, D2), dtype=jnp.float32).astype(jnp.bfloat16)
    x1b = jax.random.normal(k4, (B2, D2), dtype=jnp.float32).astype(jnp.bfloat16)
    y2 = jax.random.bernoulli(k2, 0.5, (B2,)).astype(jnp.float32)

    loss2 = contrastive_loss(x0b, x1b, y2, margin=2.0)
    jax.block_until_ready(loss2)
    ref2 = _reference(x0b.astype(jnp.float32), x1b.astype(jnp.float32), y2, margin=2.0)
    assert jnp.allclose(loss2, ref2, atol=1e-3, rtol=1e-3), (loss2, ref2)

    print("KERNEL_OK")
</pallas_src>

<mosaic_0001>
module attributes {stable_mosaic.version = 11 : i64} {
  func.func @_contrastive_loss_kernel(%arg0: i32, %arg1: i32, %arg2: memref<32x128xf32, #tpu.memory_space<vmem>>, %arg3: memref<32x128xf32, #tpu.memory_space<vmem>>, %arg4: memref<1x128xf32, #tpu.memory_space<vmem>>, %arg5: memref<1x1x1xf32, #tpu.memory_space<vmem>>, %arg6: memref<1x1xf32, #tpu.memory_space<vmem>>) attributes {dimension_semantics = [#tpu.dimension_semantics<parallel>, #tpu.dimension_semantics<arbitrary>], iteration_bounds = array<i64: 1, 1>, scalar_prefetch = 0 : i64, scratch_operands = 1 : i64, tpu.core_type = #tpu.core_type<tc>, window_params = [{transform_indices = @transform_0, window_bounds = array<i64: 32, 128>}, {transform_indices = @transform_1, window_bounds = array<i64: 32, 128>}, {transform_indices = @transform_2, window_bounds = array<i64: 1, 128>}, {transform_indices = @transform_3, window_bounds = array<i64: 1, 1, 1>}]} {
    %c0_i32 = arith.constant 0 : i32
    %0 = arith.cmpi eq, %arg1, %c0_i32 : i32
    %1 = arith.extui %0 : i1 to i32
    %c0_i32_0 = arith.constant 0 : i32
    %2 = arith.cmpi ne, %1, %c0_i32_0 : i32
    scf.if %2 {
      %cst_16 = arith.constant 0.000000e+00 : f32
      %29 = vector.broadcast %cst_16 : f32 to vector<1x1xf32>
      %c0_17 = arith.constant 0 : index
      %c0_18 = arith.constant 0 : index
      %30 = vector.load %arg6[%c0_17, %c0_18] : memref<1x1xf32, #tpu.memory_space<vmem>>, vector<1x1xf32>
      tpu.vector_store %arg6[%c0_17, %c0_18], %29 {strides = array<i32>} : memref<1x1xf32, #tpu.memory_space<vmem>>, vector<1x1xf32>,
    } else {
    }
    %c0 = arith.constant 0 : index
    %c0_1 = arith.constant 0 : index
    %3 = vector.load %arg2[%c0, %c0_1] : memref<32x128xf32, #tpu.memory_space<vmem>>, vector<32x128xf32>
    %c0_2 = arith.constant 0 : index
    %c0_3 = arith.constant 0 : index
    %4 = vector.load %arg3[%c0_2, %c0_3] : memref<32x128xf32, #tpu.memory_space<vmem>>, vector<32x128xf32>
    %c0_4 = arith.constant 0 : index
    %c0_5 = arith.constant 0 : index
    %5 = vector.load %arg4[%c0_4, %c0_5] : memref<1x128xf32, #tpu.memory_space<vmem>>, vector<1x128xf32>
    %6 = arith.subf %3, %4 : vector<32x128xf32>
    %7 = arith.mulf %6, %6 : vector<32x128xf32>
    %cst = arith.constant dense<0.000000e+00> : vector<128xf32>
    %8 = vector.multi_reduction <add>, %7, %cst [0] : vector<32x128xf32> to vector<128xf32>
    %9 = vector.shape_cast %8 : vector<128xf32> to vector<1x128xf32>
    %10 = math.sqrt %9 : vector<1x128xf32>
    %cst_6 = arith.constant 2.000000e+00 : f32
    %11 = vector.broadcast %cst_6 : f32 to vector<1x128xf32>
    %12 = arith.subf %11, %10 : vector<1x128xf32>
    %cst_7 = arith.constant 0.000000e+00 : f32
    %13 = vector.broadcast %cst_7 : f32 to vector<1x128xf32>
    %14 = arith.maximumf %12, %13 : vector<1x128xf32>
    %15 = arith.mulf %5, %9 : vector<1x128xf32>
    %cst_8 = arith.constant 1.000000e+00 : f32
    %16 = vector.broadcast %cst_8 : f32 to vector<1x128xf32>
    %17 = arith.subf %16, %5 : vector<1x128xf32>
    %18 = arith.mulf %17, %14 : vector<1x128xf32>
    %19 = arith.mulf %18, %14 : vector<1x128xf32>
    %20 = arith.addf %15, %19 : vector<1x128xf32>
    %c0_9 = arith.constant 0 : index
    %c0_10 = arith.constant 0 : index
    %21 = vector.load %arg6[%c0_9, %c0_10] : memref<1x1xf32, #tpu.memory_space<vmem>>, vector<1x1xf32>
    %cst_11 = arith.constant dense<0.000000e+00> : vector<1xf32>
    %22 = vector.multi_reduction <add>, %20, %cst_11 [1] : vector<1x128xf32> to vector<1xf32>
    %23 = vector.shape_cast %22 : vector<1xf32> to vector<1x1xf32>
    %24 = arith.addf %21, %23 : vector<1x1xf32>
    %c0_12 = arith.constant 0 : index
    %c0_13 = arith.constant 0 : index
    %25 = vector.load %arg6[%c0_12, %c0_13] : memref<1x1xf32, #tpu.memory_space<vmem>>, vector<1x1xf32>
    tpu.vector_store %arg6[%c0_12, %c0_13], %24 {strides = array<i32>} : memref<1x1xf32, #tpu.memory_space<vmem>>, vector<1x1xf32>,
    %c0_i32_14 = arith.constant 0 : i32
    %26 = arith.cmpi eq, %arg1, %c0_i32_14 : i32
    %27 = arith.extui %26 : i1 to i32
    %c0_i32_15 = arith.constant 0 : i32
    %28 = arith.cmpi ne, %27, %c0_i32_15 : i32
    scf.if %28 {
      %c0_16 = arith.constant 0 : index
      %c0_17 = arith.constant 0 : index
      %29 = vector.load %arg6[%c0_16, %c0_17] : memref<1x1xf32, #tpu.memory_space<vmem>>, vector<1x1xf32>
      %cst_18 = arith.constant 6.250000e-02 : f32
      %30 = vector.broadcast %cst_18 : f32 to vector<1x1xf32>
      %31 = arith.mulf %29, %30 : vector<1x1xf32>
      %c0_19 = arith.constant 0 : index
      %c0_20 = arith.constant 0 : index
      %c0_21 = arith.constant 0 : index
      %32 = vector.load %arg5[%c0_19, %c0_20, %c0_21] : memref<1x1x1xf32, #tpu.memory_space<vmem>>, vector<1x1x1xf32>
      %33 = vector.shape_cast %32 : vector<1x1x1xf32> to vector<1x1xf32>
      %34 = vector.shape_cast %31 : vector<1x1xf32> to vector<1x1x1xf32>
      tpu.vector_store %arg5[%c0_19, %c0_20, %c0_21], %34 {strides = array<i32>} : memref<1x1x1xf32, #tpu.memory_space<vmem>>, vector<1x1x1xf32>,
    } else {
    }
    return
  }
  func.func @transform_0(%arg0: i32, %arg1: i32) -> (i32, i32) {
    %c1_i32 = arith.constant 1 : i32
    %0 = arith.muli %arg0, %c1_i32 : i32
    %1 = arith.addi %0, %arg1 : i32
    %c0_i32 = arith.constant 0 : i32
    %c0_i32_0 = arith.constant 0 : i32
    return %c0_i32, %1 : i32, i32
  }
  func.func @transform_1(%arg0: i32, %arg1: i32) -> (i32, i32) {
    %c1_i32 = arith.constant 1 : i32
    %0 = arith.muli %arg0, %c1_i32 : i32
    %1 = arith.addi %0, %arg1 : i32
    %c0_i32 = arith.constant 0 : i32
    %c0_i32_0 = arith.constant 0 : i32
    return %c0_i32, %1 : i32, i32
  }
  func.func @transform_2(%arg0: i32, %arg1: i32) -> (i32, i32) {
    %c1_i32 = arith.constant 1 : i32
    %0 = arith.muli %arg0, %c1_i32 : i32
    %1 = arith.addi %0, %arg1 : i32
    %c0_i32 = arith.constant 0 : i32
    %c0_i32_0 = arith.constant 0 : i32
    return %c0_i32, %1 : i32, i32
  }
  func.func @transform_3(%arg0: i32, %arg1: i32) -> (i32, i32, i32) {
    %c0_i32 = arith.constant 0 : i32
    %c0_i32_0 = arith.constant 0 : i32
    %c0_i32_1 = arith.constant 0 : i32
    return %arg0, %c0_i32, %c0_i32_0 : i32, i32, i32
  }
}

</mosaic_0001>

<bundles_post_ra>
// kernel: tpu_custom_call.1
= control target key start
LH: loop header
LB: loop body
LE: loop exit
PB: predicated region body
PF: predicated region fallthrough
CT: control target
= control target key end

     0   :  { %8 = vsyncpa [#allocation4], 0  ;;  %s282_s0 = inlined_call_operand.hbm [shape: f32[32,128], index: 0, kind: input, shape index: {}]   ;;  %s283_s1 = inlined_call_operand.hbm [shape: f32[32,128], index: 1, kind: input, shape index: {}]   ;;  %s284_s2 = inlined_call_operand.vmem [shape: f32[1,128], index: 2, kind: input, shape index: {}]   ;;  %s285_s3 = inlined_call_operand.hbm [shape: f32[1,1,1], index: 3, kind: output, shape index: {}]  }
   0x1   :  { %9 = vsyncpa [#allocation7], 0 }
   0x2   :  { %10 = vsyncpa [#allocation5], 0  ;;  %s18_s14 = sshll.u32 %s282_s0, 4  ;;  %s241_s15 = smov [#allocation3]   ;;  %s19_s14 = int_to_ptr.hbm [resolvable:$true] %s18_s14 }
   0x3   :  { %s20_s16 = sshll.u32 %s241_s15, 4  ;;  %s34_s19 = sshll.u32 %s283_s1, 4  ;;  %s21_s16 = int_to_ptr.vmem [resolvable:$true] %s20_s16  ;;  %s35_s19 = int_to_ptr.hbm [resolvable:$true] %s34_s19 }
   0x4   :  { %s242_s20 = smov 128   ;;  %s243_s21 = smov 8  }
   0x5   :  { %26 = dma.hbm_to_vmem [thread:$0]  %s19_s14, 512, %s21_s16, [#allocation4], %s242_s20, %s242_s20, %s243_s21  }
   0x6   :  { %s244_s22 = smov [#allocation6]  }
   0x7   :  { %s36_s23 = sshll.u32 %s244_s22, 4  ;;  %s37_s23 = int_to_ptr.vmem [resolvable:$true] %s36_s23 }
   0x8   :  { %42 = dma.hbm_to_vmem [thread:$0]  %s35_s19, 512, %s37_s23, [#allocation7], %s242_s20, %s242_s20, %s243_s21  }
   0x9   :  { %235 = dma.done.wait [#allocation4], 512  }
   0xa   :  { %236 = vsyncadd [#allocation4], 4294966784 }
   0xb   :  { %237 = dma.done.wait [#allocation7], 512  }
   0xc   :  { %238 = vsyncadd [#allocation7], 4294966784  ;;  %v75_v0 = vld [vmem:[#allocation3] sm:$0xff]  ;;  %v76_v1 = vld [vmem:[#allocation3 + $0x8] sm:$0xff]  ;;  %vm73_vm0 = vcmask 0   ;;  %v245_v25 = vmov 0.0  }
   0xd   :  { %v77_v2 = vld [vmem:[#allocation3 + $0x10] sm:$0xff]  ;;  %v78_v3 = vld [vmem:[#allocation3 + $0x18] sm:$0xff]  ;;  %v79_v4 = vld [vmem:[#allocation6] sm:$0xff]  ;;  %74 = vst.msk [vmem:[#allocation2] sm:$0x1] %vm73_vm0, %v245_v25  ;;  %vm121_vm3 = vcmask 1040384  }
   0xe   :  { %v80_v5 = vld [vmem:[#allocation6 + $0x8] sm:$0xff]  ;;  %v81_v6 = vld [vmem:[#allocation6 + $0x10] sm:$0xff]  ;;  %v82_v7 = vld [vmem:[#allocation6 + $0x18] sm:$0xff]  ;;  %v84_v8 = vsub.f32 %v75_v0, %v79_v4  ;;  %s246_s24 = smov [#allocation8]   ;;  %s141_s27 = sshll.u32 %s285_s3, 4  ;;  %s142_s27 = int_to_ptr.hbm [resolvable:$true] %s141_s27 }
   0xf   :  { %v85_v9 = vsub.f32 %v76_v1, %v80_v5  ;;  %v86_v10 = vsub.f32 %v77_v2, %v81_v6  ;;  %v87_v11 = vsub.f32 %v78_v3, %v82_v7  ;;  %v83_v34 = vld [vmem:[%s284_s2] sm:$0x1]  ;;  %s139_s25 = sshll.u32 %s246_s24, 4  ;;  %s140_s25 = int_to_ptr.vmem [resolvable:$true] %s139_s25 }
  0x10   :  { %v88_v12 = vmul.f32 %v84_v8, %v84_v8  ;;  %v116_v38 = vsub.f32 1.0, %v83_v34 }
  0x11   :  { %v89_v13 = vmul.f32 %v85_v9, %v85_v9  ;;  %v90_v14 = vmul.f32 %v86_v10, %v86_v10  ;;  %v91_v15 = vmul.f32 %v87_v11, %v87_v11 }
  0x13   :  { %v92_v16 = vadd.f32 %v89_v13, %v88_v12 }
  0x14   :  { %v120_v45 = vld [vmem:[#allocation2] sm:$0x1] }
  0x15   :  { %v93_v17 = vadd.f32 %v92_v16, %v90_v14 }
  0x17   :  { %v94_v18 = vadd.f32 %v93_v17, %v91_v15 }
  0x19   :  { %v95_v19 = vrot.slane %v94_v18, 4 }
  0x1b   :  { %v96_v20 = vadd.f32 %v95_v19, %v94_v18 }
  0x1d   :  { %v97_v21 = vrot.slane %v96_v20, 2 }
  0x1f   :  { %v98_v22 = vadd.f32 %v97_v21, %v96_v20 }
  0x21   :  { %v99_v23 = vrot.slane %v98_v22, 1 }
  0x23   :  { %v100_v24 = vadd.f32 %v99_v23, %v98_v22 }
  0x25   :  { %161 = vrsqrt.f32 %v100_v24  ;;  %vm108_vm1 = vcmp.eq.f32.partialorder %v100_v24, inf  ;;  %v111_v32 = vand.u32 2147483648, %v100_v24  ;;  %vm110_vm2 = vcmp.eq.f32.partialorder %v100_v24, 0.0 }
  0x26   :  { %v115_v40 = vmul.f32 %v100_v24, %v83_v34 }
  0x2b   :  { %v162_v26 = vpop.eup %161 }
  0x2c   :  { %v102_v27 = vmul.f32 %v162_v26, %v100_v24 }
  0x2e   :  { %v103_v28 = vmul.f32 %v162_v26, %v102_v27 }
  0x30   :  { %v104_v29 = vmul.f32 0.5, %v103_v28 }
  0x32   :  { %v105_v30 = vsub.f32 1.5, %v104_v29 }
  0x34   :  { %v106_v31 = vmul.f32 %v162_v26, %v105_v30 }
  0x36   :  { %v107_v33 = vmul.f32 %v106_v31, %v100_v24 }
  0x38   :  { %v109_v35 = vsel %vm108_vm1, %v100_v24, %v107_v33 }
  0x39   :  { %v112_v36 = vsel %vm110_vm2, %v111_v32, %v109_v35 }
  0x3a   :  { %v113_v37 = vsub.f32 2.0, %v112_v36 }
  0x3c   :  { %v114_v39 = vmax.f32 %v113_v37, 0.0 }
  0x3e   :  { %v117_v41 = vmul.f32 %v116_v38, %v114_v39 }
  0x40   :  { %v118_v42 = vmul.f32 %v117_v41, %v114_v39 }
  0x42   :  { %v119_v43 = vadd.f32 %v118_v42, %v115_v40 }
  0x44   :  { %v122_v44 = vsel %vm121_vm3, %v119_v43, 0.0 }
  0x45   :  { %123 = vadd.xlane.f32.xlu0 %v122_v44 }
  0xb8   :  { %v124_v46 = vpop.xlane.xlu0 %123 }
  0xb9   :  { %v125_v47 = vadd.f32 %v124_v46, %v120_v45 }
  0xbb   :  { %127 = vst.msk [vmem:[#allocation2] sm:$0x1] %vm73_vm0, %v125_v47 }
  0xc2   :  { %v131_v48 = vld [vmem:[#allocation2] sm:$0x1] }
  0xc3   :  { %v132_v49 = vmul.f32 0.0625, %v131_v48 }
  0xc5   :  { %133 = vst.msk [vmem:[#allocation8] sm:$0x1] %vm73_vm0, %v132_v49 }
  0xc6   :  { %144 = dma.vmem_to_hbm [thread:$0]  %s140_s25, 16, %s142_s27, [#allocation5]  }
  0xc7   :  { %239 = dma.done.wait [#allocation5], 16  }
  0xc8   :  { %240 = vsyncadd [#allocation5], 4294967280 }
  0xc9   :  { %149 = vsyncpa [#allocation4], 1 }
  0xca   :  { %150 = vsyncpa [#allocation7], 1 }
  0xcb   :  { %151 = vsyncpa [#allocation5], 1 }

</bundles_post_ra>
